<compile_context>
chip_gen: v5e
topology: v5e:2x2
jax: 0.10.0
libtpu: 0.0.40
codegen_flags: <defaults>
</compile_context>

<pallas_src>
import math

import jax
import jax.numpy as jnp
from jax.experimental import pallas as pl
from jax.experimental.pallas import tpu as pltpu

LANE = 128          # TPU lane width (last dim)
BATCH_ALIGN = 16    # multiple of f32 (8-row) and bf16 (16-row) sublane tiles
MAX_TILE_B = 2048   # cap on batch rows per grid step


def _round_up(n, m):
    return (n + m - 1) // m * m


def _cdiv(a, b):
    return -(-a // b)


def mlp_kernel(x_ref, w1_ref, b1_ref, w2_ref, b2_ref, w3_ref, b3_ref, o_ref):
    # f32 -> bf16 cast in-kernel (VPU on VMEM-resident data): avoids both a
    # wrapper-side HBM pass over x and padded-lane input traffic.
    x = x_ref[...].astype(jnp.bfloat16)
    # fc1 + ReLU  (bf16 operands, f32 accumulation on the MXU)
    h1 = jnp.dot(x, w1_ref[...], preferred_element_type=jnp.float32)
    h1 = jnp.maximum(h1 + b1_ref[...], 0.0).astype(jnp.bfloat16)
    # fc2 + ReLU
    h2 = jnp.dot(h1, w2_ref[...], preferred_element_type=jnp.float32)
    h2 = jnp.maximum(h2 + b2_ref[...], 0.0).astype(jnp.bfloat16)
    # fc3 (logits, no activation); bf16 store on a lane-dense 128-wide block.
    out = jnp.dot(h2, w3_ref[...], preferred_element_type=jnp.float32)
    o_ref[...] = (out + b3_ref[...]).astype(o_ref.dtype)


def init_params(key, input_dim, hidden_dim, num_classes):
    """PyTorch nn.Linear default init: U(-1/sqrt(fan_in), +1/sqrt(fan_in))."""
    keys = jax.random.split(key, 6)

    def linear(kw, kb, fan_in, fan_out):
        bound = 1.0 / math.sqrt(fan_in)
        w = jax.random.uniform(kw, (fan_in, fan_out), jnp.float32, -bound, bound)
        b = jax.random.uniform(kb, (fan_out,), jnp.float32, -bound, bound)
        return w, b

    w1, b1 = linear(keys[0], keys[1], input_dim, hidden_dim)
    w2, b2 = linear(keys[2], keys[3], hidden_dim, hidden_dim)
    w3, b3 = linear(keys[4], keys[5], hidden_dim, num_classes)
    return (w1, b1, w2, b2, w3, b3)


def _pad2d(a, rows, cols):
    r, c = a.shape
    return jnp.pad(a, ((0, rows - r), (0, cols - c)))


def prepare_params(params):
    """Zero-pad hidden/class dims to multiples of 128 lanes; weights -> bf16.

    x's feature dim (W1 rows) is NOT padded: the kernel reads x at its true
    width.  Zero padding keeps the math exact: padded W rows/cols contribute
    0, padded bias lanes are 0, so padded hidden/logit lanes stay 0.
    """
    w1, b1, w2, b2, w3, b3 = params
    d_in, d_h = w1.shape
    d_c = w3.shape[1]
    dp_h = _round_up(d_h, LANE)
    dp_c = _round_up(d_c, LANE)

    w1p = _pad2d(w1, d_in, dp_h).astype(jnp.bfloat16)
    w2p = _pad2d(w2, dp_h, dp_h).astype(jnp.bfloat16)
    w3p = _pad2d(w3, dp_h, dp_c).astype(jnp.bfloat16)
    b1p = _pad2d(b1.reshape(1, -1), 1, dp_h).astype(jnp.float32)
    b2p = _pad2d(b2.reshape(1, -1), 1, dp_h).astype(jnp.float32)
    b3p = _pad2d(b3.reshape(1, -1), 1, dp_c).astype(jnp.float32)
    return (w1p, b1p, w2p, b2p, w3p, b3p), (d_in, d_h, d_c)


def _choose_batch_tiling(B, max_tile_b):
    """Pick (tile_b, padded_batch) with minimal padding waste.

    * tile_b is 16-row aligned (covers f32 8-row and bf16 16-row tiles).
    * Whenever more than one minimal tile is needed, use an EVEN number of
      grid steps >= 2 so ("parallel",) shards them across v7x's two
      TensorCores; tiles are capped at max_tile_b rows.
    * Padding waste is at most one alignment group per step (not a whole
      fixed-size tile).
    """
    b_min = _round_up(max(B, 1), BATCH_ALIGN)
    cap = _round_up(max_tile_b, BATCH_ALIGN)
    if b_min <= BATCH_ALIGN:
        return b_min, b_min                      # single minimal tile
    steps = max(2, _cdiv(b_min, cap))
    if steps % 2:
        steps += 1                               # even -> balances the 2 TCs
    tile_b = _round_up(_cdiv(b_min, steps), BATCH_ALIGN)
    return tile_b, steps * tile_b


def age_group_classifier_forward(x, prepared, *, max_tile_b=MAX_TILE_B):
    """Fused MLP forward.  x: [B, input_dim] float32 -> [B, num_classes] float32."""
    (w1, b1, w2, b2, w3, b3), (d_in, _d_h, d_c) = prepared
    B = x.shape[0]
    dp_h = w1.shape[1]
    dp_c = w3.shape[1]

    tile_b, b_pad = _choose_batch_tiling(B, max_tile_b)
    grid = (b_pad // tile_b,)

    # Pad the batch only when needed (zero rows -> zero logits, sliced off).
    xp = x if b_pad == B else jnp.pad(x, ((0, b_pad - B), (0, 0)))

    def batch_map(i):
        return (i, 0)

    def const_map(i):
        return (0, 0)      # same block every step -> weights DMA'd once per core

    out = pl.pallas_call(
        mlp_kernel,
        out_shape=jax.ShapeDtypeStruct((b_pad, dp_c), jnp.bfloat16),
        grid_spec=pltpu.PrefetchScalarGridSpec(
            num_scalar_prefetch=0,
            grid=grid,
            in_specs=[
                pl.BlockSpec((tile_b, d_in), batch_map),    # x tile (f32, unpadded lanes)
                pl.BlockSpec((d_in, dp_h), const_map),      # W1 (bf16)
                pl.BlockSpec((1, dp_h), const_map),         # b1 (f32)
                pl.BlockSpec((dp_h, dp_h), const_map),      # W2 (bf16)
                pl.BlockSpec((1, dp_h), const_map),         # b2 (f32)
                pl.BlockSpec((dp_h, dp_c), const_map),      # W3 (bf16)
                pl.BlockSpec((1, dp_c), const_map),         # b3 (f32)
            ],
            out_specs=pl.BlockSpec((tile_b, dp_c), batch_map),
        ),
        compiler_params=pltpu.CompilerParams(
            dimension_semantics=("parallel",),   # batch steps shard across TCs
            # VMEM/step < ~6 MiB at the 2048-row cap -> default scoped limit is
            # fine on v5e/v6e/v7x; no vmem_limit_bytes override needed.
        ),
    )(xp, w1, b1, w2, b2, w3, b3)

    # Tiny slice of real rows/lanes; fuses with the downstream consumer under jit.
    return out[:B, :d_c].astype(jnp.float32)


def reference_forward_f32(x, params):
    """Original full-f32 semantics (PyTorch module in f32)."""
    w1, b1, w2, b2, w3, b3 = params
    h1 = jnp.maximum(x @ w1 + b1, 0.0)
    h2 = jnp.maximum(h1 @ w2 + b2, 0.0)
    return h2 @ w3 + b3


def reference_forward_kernel_path(x, params):
    """Same bf16-weight / f32-accumulation / bf16-logit path as the kernel."""
    w1, b1, w2, b2, w3, b3 = params
    xb = x.astype(jnp.bfloat16)
    h1 = jnp.dot(xb, w1.astype(jnp.bfloat16), preferred_element_type=jnp.float32) + b1
    h1 = jnp.maximum(h1, 0.0).astype(jnp.bfloat16)
    h2 = jnp.dot(h1, w2.astype(jnp.bfloat16), preferred_element_type=jnp.float32) + b2
    h2 = jnp.maximum(h2, 0.0).astype(jnp.bfloat16)
    logits = jnp.dot(h2, w3.astype(jnp.bfloat16), preferred_element_type=jnp.float32) + b3
    return logits.astype(jnp.bfloat16).astype(jnp.float32)


if __name__ == "__main__":
    input_dim, hidden_dim, num_classes = 32, 64, 10

    key = jax.random.PRNGKey(0)
    k_x, k_p, k_x2 = jax.random.split(key, 3)
    params = init_params(k_p, input_dim, hidden_dim, num_classes)
    prepared = prepare_params(params)

    # Small batch: single-tile grid path.
    B = 8
    x = jax.random.normal(k_x, (B, input_dim), jnp.float32)
    out = jax.block_until_ready(age_group_classifier_forward(x, prepared))
    assert out.shape == (B, num_classes)
    assert jnp.allclose(out, reference_forward_kernel_path(x, params),
                        atol=1e-2, rtol=1e-2), "mismatch vs bf16-path reference (B=8)"
    assert jnp.allclose(out, reference_forward_f32(x, params),
                        atol=6e-2, rtol=6e-2), "mismatch vs f32 reference (B=8)"

    # Non-multiple-of-tile batch: exercises even multi-step grid + tail padding.
    B2 = 200
    x2 = jax.random.normal(k_x2, (B2, input_dim), jnp.float32)
    out2 = jax.block_until_ready(age_group_classifier_forward(x2, prepared))
    assert out2.shape == (B2, num_classes)
    assert jnp.allclose(out2, reference_forward_kernel_path(x2, params),
                        atol=1e-2, rtol=1e-2), "mismatch vs bf16-path reference (B=200)"
    assert jnp.allclose(out2, reference_forward_f32(x2, params),
                        atol=6e-2, rtol=6e-2), "mismatch vs f32 reference (B=200)"

    print("KERNEL_OK")
</pallas_src>

<mosaic_0001>
module attributes {stable_mosaic.version = 11 : i64} {
  func.func @mlp_kernel(%arg0: i32, %arg1: memref<16x32xf32, #tpu.memory_space<vmem>>, %arg2: memref<32x128xbf16, #tpu.memory_space<vmem>>, %arg3: memref<1x128xf32, #tpu.memory_space<vmem>>, %arg4: memref<128x128xbf16, #tpu.memory_space<vmem>>, %arg5: memref<1x128xf32, #tpu.memory_space<vmem>>, %arg6: memref<128x128xbf16, #tpu.memory_space<vmem>>, %arg7: memref<1x128xf32, #tpu.memory_space<vmem>>, %arg8: memref<16x128xbf16, #tpu.memory_space<vmem>>) attributes {dimension_semantics = [#tpu.dimension_semantics<parallel>], iteration_bounds = array<i64: 1>, scalar_prefetch = 0 : i64, scratch_operands = 0 : i64, tpu.core_type = #tpu.core_type<tc>, window_params = [{transform_indices = @transform_0, window_bounds = array<i64: 16, 32>}, {pipeline_mode = #tpu.pipeline_mode<synchronous>, transform_indices = @transform_1, window_bounds = array<i64: 32, 128>}, {pipeline_mode = #tpu.pipeline_mode<synchronous>, transform_indices = @transform_2, window_bounds = array<i64: 1, 128>}, {pipeline_mode = #tpu.pipeline_mode<synchronous>, transform_indices = @transform_3, window_bounds = array<i64: 128, 128>}, {pipeline_mode = #tpu.pipeline_mode<synchronous>, transform_indices = @transform_4, window_bounds = array<i64: 1, 128>}, {pipeline_mode = #tpu.pipeline_mode<synchronous>, transform_indices = @transform_5, window_bounds = array<i64: 128, 128>}, {pipeline_mode = #tpu.pipeline_mode<synchronous>, transform_indices = @transform_6, window_bounds = array<i64: 1, 128>}, {transform_indices = @transform_7, window_bounds = array<i64: 16, 128>}]} {
    %c0 = arith.constant 0 : index
    %c0_0 = arith.constant 0 : index
    %0 = vector.load %arg1[%c0, %c0_0] : memref<16x32xf32, #tpu.memory_space<vmem>>, vector<16x32xf32>
    %1 = arith.truncf %0 : vector<16x32xf32> to vector<16x32xbf16>
    %c0_1 = arith.constant 0 : index
    %c0_2 = arith.constant 0 : index
    %2 = vector.load %arg2[%c0_1, %c0_2] : memref<32x128xbf16, #tpu.memory_space<vmem>>, vector<32x128xbf16>
    %cst = arith.constant dense<0.000000e+00> : vector<16x128xf32>
    %3 = tpu.matmul %1, %2, %cst {dimension_numbers = #tpu.dot_dimension_numbers<[1], [0], [0], [1], [0, 0, 1, 1], [], []>} : vector<16x32xbf16>, vector<32x128xbf16>, vector<16x128xf32> -> vector<16x128xf32>
    %c0_3 = arith.constant 0 : index
    %c0_4 = arith.constant 0 : index
    %4 = vector.load %arg3[%c0_3, %c0_4] : memref<1x128xf32, #tpu.memory_space<vmem>>, vector<1x128xf32>
    %5 = vector.broadcast %4 : vector<1x128xf32> to vector<16x128xf32>
    %6 = arith.addf %3, %5 : vector<16x128xf32>
    %cst_5 = arith.constant 0.000000e+00 : f32
    %7 = vector.broadcast %cst_5 : f32 to vector<16x128xf32>
    %8 = arith.maximumf %6, %7 : vector<16x128xf32>
    %9 = arith.truncf %8 : vector<16x128xf32> to vector<16x128xbf16>
    %c0_6 = arith.constant 0 : index
    %c0_7 = arith.constant 0 : index
    %10 = vector.load %arg4[%c0_6, %c0_7] : memref<128x128xbf16, #tpu.memory_space<vmem>>, vector<128x128xbf16>
    %cst_8 = arith.constant dense<0.000000e+00> : vector<16x128xf32>
    %11 = tpu.matmul %9, %10, %cst_8 {dimension_numbers = #tpu.dot_dimension_numbers<[1], [0], [0], [1], [0, 0, 1, 1], [], []>} : vector<16x128xbf16>, vector<128x128xbf16>, vector<16x128xf32> -> vector<16x128xf32>
    %c0_9 = arith.constant 0 : index
    %c0_10 = arith.constant 0 : index
    %12 = vector.load %arg5[%c0_9, %c0_10] : memref<1x128xf32, #tpu.memory_space<vmem>>, vector<1x128xf32>
    %13 = vector.broadcast %12 : vector<1x128xf32> to vector<16x128xf32>
    %14 = arith.addf %11, %13 : vector<16x128xf32>
    %cst_11 = arith.constant 0.000000e+00 : f32
    %15 = vector.broadcast %cst_11 : f32 to vector<16x128xf32>
    %16 = arith.maximumf %14, %15 : vector<16x128xf32>
    %17 = arith.truncf %16 : vector<16x128xf32> to vector<16x128xbf16>
    %c0_12 = arith.constant 0 : index
    %c0_13 = arith.constant 0 : index
    %18 = vector.load %arg6[%c0_12, %c0_13] : memref<128x128xbf16, #tpu.memory_space<vmem>>, vector<128x128xbf16>
    %cst_14 = arith.constant dense<0.000000e+00> : vector<16x128xf32>
    %19 = tpu.matmul %17, %18, %cst_14 {dimension_numbers = #tpu.dot_dimension_numbers<[1], [0], [0], [1], [0, 0, 1, 1], [], []>} : vector<16x128xbf16>, vector<128x128xbf16>, vector<16x128xf32> -> vector<16x128xf32>
    %c0_15 = arith.constant 0 : index
    %c0_16 = arith.constant 0 : index
    %20 = vector.load %arg7[%c0_15, %c0_16] : memref<1x128xf32, #tpu.memory_space<vmem>>, vector<1x128xf32>
    %21 = vector.broadcast %20 : vector<1x128xf32> to vector<16x128xf32>
    %22 = arith.addf %19, %21 : vector<16x128xf32>
    %23 = arith.truncf %22 : vector<16x128xf32> to vector<16x128xbf16>
    %c0_17 = arith.constant 0 : index
    %c0_18 = arith.constant 0 : index
    %24 = vector.load %arg8[%c0_17, %c0_18] : memref<16x128xbf16, #tpu.memory_space<vmem>>, vector<16x128xbf16>
    tpu.vector_store %arg8[%c0_17, %c0_18], %23 {strides = array<i32>} : memref<16x128xbf16, #tpu.memory_space<vmem>>, vector<16x128xbf16>,
    return
  }
  func.func @transform_0(%arg0: i32) -> (i32, i32) {
    %c0_i32 = arith.constant 0 : i32
    %c0_i32_0 = arith.constant 0 : i32
    return %arg0, %c0_i32 : i32, i32
  }
  func.func @transform_1(%arg0: i32) -> (i32, i32) {
    %c0_i32 = arith.constant 0 : i32
    %c0_i32_0 = arith.constant 0 : i32
    %c0_i32_1 = arith.constant 0 : i32
    return %c0_i32, %c0_i32_0 : i32, i32
  }
  func.func @transform_2(%arg0: i32) -> (i32, i32) {
    %c0_i32 = arith.constant 0 : i32
    %c0_i32_0 = arith.constant 0 : i32
    %c0_i32_1 = arith.constant 0 : i32
    return %c0_i32, %c0_i32_0 : i32, i32
  }
  func.func @transform_3(%arg0: i32) -> (i32, i32) {
    %c0_i32 = arith.constant 0 : i32
    %c0_i32_0 = arith.constant 0 : i32
    %c0_i32_1 = arith.constant 0 : i32
    return %c0_i32, %c0_i32_0 : i32, i32
  }
  func.func @transform_4(%arg0: i32) -> (i32, i32) {
    %c0_i32 = arith.constant 0 : i32
    %c0_i32_0 = arith.constant 0 : i32
    %c0_i32_1 = arith.constant 0 : i32
    return %c0_i32, %c0_i32_0 : i32, i32
  }
  func.func @transform_5(%arg0: i32) -> (i32, i32) {
    %c0_i32 = arith.constant 0 : i32
    %c0_i32_0 = arith.constant 0 : i32
    %c0_i32_1 = arith.constant 0 : i32
    return %c0_i32, %c0_i32_0 : i32, i32
  }
  func.func @transform_6(%arg0: i32) -> (i32, i32) {
    %c0_i32 = arith.constant 0 : i32
    %c0_i32_0 = arith.constant 0 : i32
    %c0_i32_1 = arith.constant 0 : i32
    return %c0_i32, %c0_i32_0 : i32, i32
  }
  func.func @transform_7(%arg0: i32) -> (i32, i32) {
    %c0_i32 = arith.constant 0 : i32
    %c0_i32_0 = arith.constant 0 : i32
    return %arg0, %c0_i32 : i32, i32
  }
}

</mosaic_0001>

<bundles_post_ra>
// kernel: tpu_custom_call.1
= control target key start
LH: loop header
LB: loop body
LE: loop exit
PB: predicated region body
PF: predicated region fallthrough
CT: control target
= control target key end

     0   :  { %12 = vsyncpa [#allocation3], 0  ;;  %s648_s0 = inlined_call_operand.hbm [shape: f32[16,32], index: 0, kind: input, shape index: {}]   ;;  %s649_s1 = inlined_call_operand.hbm [shape: bf16[32,128], index: 1, kind: input, shape index: {}]   ;;  %s650_s2 = inlined_call_operand.vmem [shape: f32[1,128], index: 2, kind: input, shape index: {}]   ;;  %s651_s3 = inlined_call_operand.hbm [shape: bf16[128,128], index: 3, kind: input, shape index: {}]   ;;  %s652_s4 = inlined_call_operand.vmem [shape: f32[1,128], index: 4, kind: input, shape index: {}]   ;;  %s653_s5 = inlined_call_operand.hbm [shape: bf16[128,128], index: 5, kind: input, shape index: {}]   ;;  %s654_s6 = inlined_call_operand.vmem [shape: f32[1,128], index: 6, kind: input, shape index: {}]   ;;  %s655_s7 = inlined_call_operand.hbm [shape: bf16[16,128], index: 7, kind: output, shape index: {}]  }
   0x1   :  { %13 = vsyncpa [#allocation6], 0 }
   0x2   :  { %14 = vsyncpa [#allocation9], 0  ;;  %s33_s26 = sshll.u32 %s649_s1, 4  ;;  %s34_s26 = int_to_ptr.hbm [resolvable:$true] %s33_s26 }
   0x3   :  { %15 = vsyncpa [#allocation4], 0  ;;  %s563_s27 = smov [#allocation5]   ;;  %s20_s8 = sshll.u32 %s648_s0, 4  ;;  %s21_s8 = int_to_ptr.hbm [resolvable:$true] %s20_s8 }
   0x4   :  { %s35_s28 = sshll.u32 %s563_s27, 4  ;;  %s564_s9 = smov 64   ;;  %s36_s28 = int_to_ptr.vmem [resolvable:$true] %s35_s28 }
   0x5   :  { %s565_s10 = smov 4   ;;  %s566_s11 = smov [#allocation2]  }
   0x6   :  { %41 = dma.hbm_to_vmem [thread:$0]  %s34_s26, 256, %s36_s28, [#allocation6], %s564_s9, %s564_s9, %s565_s10  }
   0x7   :  { %s22_s12 = sshll.u32 %s566_s11, 4  ;;  %s567_s1 = smov 128   ;;  %s23_s12 = int_to_ptr.vmem [resolvable:$true] %s22_s12 }
   0x8   :  { %s568_s13 = smov 8   ;;  %s48_s16 = sshll.u32 %s651_s3, 4  ;;  %s49_s16 = int_to_ptr.hbm [resolvable:$true] %s48_s16 }
   0x9   :  { %28 = dma.hbm_to_vmem [thread:$0]  %s21_s8, 256, %s23_s12, [#allocation3], %s567_s1, %s567_s1, %s568_s13  }
   0xa   :  { %s569_s17 = smov [#allocation7]   ;;  %s63_s20 = sshll.u32 %s653_s5, 4  ;;  %s64_s20 = int_to_ptr.hbm [resolvable:$true] %s63_s20 }
   0xb   :  { %s50_s0 = sshll.u32 %s569_s17, 4  ;;  %s570_s21 = smov [#allocation8]   ;;  %s51_s0 = int_to_ptr.vmem [resolvable:$true] %s50_s0 }
   0xc   :  { %56 = dma.hbm_to_vmem [thread:$0]  %s49_s16, 1024, %s51_s0, [#allocation6], %s564_s9, %s564_s9, %s565_s10  }
   0xd   :  { %s65_s22 = sshll.u32 %s570_s21, 4  ;;  %s66_s22 = int_to_ptr.vmem [resolvable:$true] %s65_s22 }
   0xe   :  { %71 = dma.hbm_to_vmem [thread:$0]  %s64_s20, 1024, %s66_s22, [#allocation9], %s564_s9, %s564_s9, %s565_s10  }
   0xf   :  { %555 = dma.done.wait [#allocation3], 256  }
  0x10   :  { %556 = vsyncadd [#allocation3], 4294967040 }
  0x11   :  { %557 = dma.done.wait [#allocation6], 1280  }
  0x12   :  { %558 = vsyncadd [#allocation6], 4294966016 }
  0x13   :  { %559 = dma.done.wait [#allocation9], 1024  }
  0x14   :  { %560 = vsyncadd [#allocation9], 4294966272  ;;  %v401_v0 = vld [vmem:[#allocation5 + $0x8] sm:$0xff]  ;;  %v400_v1 = vld [vmem:[#allocation5] sm:$0xff]  ;;  %vm114_vm0 = vcmask 261120   ;;  %s571_s26 = smov [#allocation10]  }
  0x15   :  { %v409_v2 = vld [vmem:[#allocation7 + $0x38] sm:$0xff]  ;;  %124 = vmatpush.bf16.msra.mxu0 %v401_v0  ;;  %v91_v3 = vld [vmem:[#allocation2] sm:$0xff]  ;;  %v92_v4 = vld [vmem:[#allocation2 + $0x8] sm:$0xff]  ;;  %s310_s27 = sshll.u32 %s571_s26, 4  ;;  %s312_s30 = sshll.u32 %s655_s7, 4  ;;  %s311_s27 = int_to_ptr.vmem [resolvable:$true] %s310_s27  ;;  %s313_s30 = int_to_ptr.hbm [resolvable:$true] %s312_s30 }
  0x16   :  { %203 = vmatpush.bf16.msra.mxu1 %v409_v2  ;;  %v408_v5 = vld [vmem:[#allocation7 + $0x30] sm:$0xff]  ;;  %v93_v6 = vpack.c.bf16 %v92_v4, %v91_v3  ;;  %v407_v7 = vld [vmem:[#allocation7 + $0x28] sm:$0xff]  ;;  %v406_v8 = vld [vmem:[#allocation7 + $0x20] sm:$0xff] }
  0x17   :  { %v405_v9 = vld [vmem:[#allocation7 + $0x18] sm:$0xff]  ;;  %v404_v10 = vld [vmem:[#allocation7 + $0x10] sm:$0xff]  ;;  %v403_v11 = vld [vmem:[#allocation7 + $0x8] sm:$0xff] }
  0x18   :  { %v402_v12 = vld [vmem:[#allocation7] sm:$0xff]  ;;  %v417_v13 = vld [vmem:[#allocation8 + $0x38] sm:$0xff]  ;;  %v416_v14 = vld [vmem:[#allocation8 + $0x30] sm:$0xff] }
  0x19   :  { %125 = vmatpush.bf16.msra.mxu0 %v400_v1  ;;  %288 = vmatpush.bf16.msra.mxu2 %v417_v13  ;;  %v415_v15 = vld [vmem:[#allocation8 + $0x28] sm:$0xff]  ;;  %v414_v16 = vld [vmem:[#allocation8 + $0x20] sm:$0xff]  ;;  %v413_v25 = vld [vmem:[#allocation8 + $0x18] sm:$0xff] }
  0x1a   :  { %204 = vmatpush.bf16.msra.mxu1 %v408_v5  ;;  %v432_v18 = vld [vmem:[%s650_s2] ss:$0 sm:$0xff]  ;;  %v412_v26 = vld [vmem:[#allocation8 + $0x10] sm:$0xff]  ;;  %v411_v27 = vld [vmem:[#allocation8 + $0x8] sm:$0xff] }
  0x1b   :  { %v410_v28 = vld [vmem:[#allocation8] sm:$0xff] }
  0x1c   :  { %335 = vmatmul.msk.bf16.vlgmr.msra.gmra.mxu0 %vm114_vm0, %v93_v6  ;;  %v433_v30 = vld [vmem:[%s652_s4] ss:$0 sm:$0xff] }
  0x1d   :  { %289 = vmatpush.bf16.msra.mxu2 %v416_v14  ;;  %v434_v38 = vld [vmem:[%s654_s6] ss:$0 sm:$0xff] }
  0x1e   :  { %205 = vmatpush.bf16.msra.mxu1 %v407_v7 }
  0x21   :  { %290 = vmatpush.bf16.msra.mxu2 %v415_v15 }
  0x22   :  { %206 = vmatpush.bf16.msra.mxu1 %v406_v8 }
  0x25   :  { %291 = vmatpush.bf16.msra.mxu2 %v414_v16 }
  0x26   :  { %207 = vmatpush.bf16.msra.mxu1 %v405_v9 }
  0x29   :  { %292 = vmatpush.bf16.msra.mxu2 %v413_v25 }
  0x2a   :  { %208 = vmatpush.bf16.msra.mxu1 %v404_v10 }
  0x2d   :  { %293 = vmatpush.bf16.msra.mxu2 %v412_v26 }
  0x2e   :  { %209 = vmatpush.bf16.msra.mxu1 %v403_v11 }
  0x31   :  { %294 = vmatpush.bf16.msra.mxu2 %v411_v27 }
  0x32   :  { %210 = vmatpush.bf16.msra.mxu1 %v402_v12 }
  0x35   :  { %295 = vmatpush.bf16.msra.mxu2 %v410_v28 }
  0x99   :  { %v127_v17 = vpop.f32.mrf.mxu0 }
  0x9a   :  { %v128_v19 = vadd.f32 %v432_v18, %v127_v17 }
  0x9c   :  { %v132_v22 = vmax.f32 %v128_v19, 0.0 }
  0xa1   :  { %v129_v20 = vpop.f32.mrf.mxu0 }
  0xa2   :  { %v130_v21 = vadd.f32 %v432_v18, %v129_v20 }
  0xa4   :  { %v133_v23 = vmax.f32 %v130_v21, 0.0 }
  0xa6   :  { %v134_v24 = vpack.c.bf16 %v133_v23, %v132_v22 }
  0xa8   :  { %211 = vmatmul.bf16.vlgmr.msra.gmra.mxu1 %v134_v24 }
 0x125   :  { %v212_v29 = vpop.f32.mrf.mxu1 }
 0x126   :  { %v213_v31 = vadd.f32 %v433_v30, %v212_v29 }
 0x128   :  { %v217_v34 = vmax.f32 %v213_v31, 0.0 }
 0x12d   :  { %v214_v32 = vpop.f32.mrf.mxu1 }
 0x12e   :  { %v215_v33 = vadd.f32 %v433_v30, %v214_v32 }
 0x130   :  { %v218_v35 = vmax.f32 %v215_v33, 0.0 }
 0x132   :  { %v219_v36 = vpack.c.bf16 %v218_v35, %v217_v34 }
 0x134   :  { %296 = vmatmul.bf16.vlgmr.msra.gmra.mxu2 %v219_v36 }
 0x1b7   :  { %v297_v37 = vpop.f32.mrf.mxu2 }
 0x1b8   :  { %v298_v40 = vadd.f32 %v434_v38, %v297_v37 }
 0x1bf   :  { %v299_v39 = vpop.f32.mrf.mxu2 }
 0x1c0   :  { %v300_v41 = vadd.f32 %v434_v38, %v299_v39 }
 0x1c2   :  { %v421_v42 = vpack.c.bf16 %v300_v41, %v298_v40 }
 0x1c4   :  { %422 = vst [vmem:[#allocation10] sm:$0xff] %v421_v42  }
 0x1c5   :  { %318 = dma.vmem_to_hbm [thread:$0]  %s311_s27, 128, %s313_s30, [#allocation4], %s564_s9, %s564_s9, %s565_s10  }
 0x1c6   :  { %561 = dma.done.wait [#allocation4], 128  }
 0x1c7   :  { %562 = vsyncadd [#allocation4], 4294967168 }
 0x1c8   :  { %323 = vsyncpa [#allocation3], 1 }
 0x1c9   :  { %324 = vsyncpa [#allocation6], 1 }
 0x1ca   :  { %325 = vsyncpa [#allocation9], 1 }
 0x1cb   :  { %326 = vsyncpa [#allocation4], 1 }

</bundles_post_ra>
